<compile_context>
chip_gen: v7x
topology: tpu7x:2x2x1
jax: 0.10.0
libtpu: 0.0.40
codegen_flags: <defaults>
</compile_context>

<pallas_src>
import functools

import jax
import jax.numpy as jnp
from jax.experimental import pallas as pl
from jax.experimental.pallas import tpu as pltpu


def _round_up(x, m):
    return (x + m - 1) // m * m


def _leaky_relu(x, slope=0.01):
    return jnp.where(x >= 0, x, slope * x)


def condnet_kernel(x_ref, w1_ref, b1_ref, w2_ref, b2_ref, w3_ref, b3_ref,
                   o_ref):
    """Single grid step: trunk (2x Linear+LeakyReLU) + packed-head matmul."""
    h1 = jnp.dot(x_ref[...], w1_ref[...],
                 preferred_element_type=jnp.float32) + b1_ref[...]
    h1 = _leaky_relu(h1)
    h2 = jnp.dot(h1, w2_ref[...],
                 preferred_element_type=jnp.float32) + b2_ref[...]
    c = _leaky_relu(h2)
    # All heads fused into one lane-dense (Bp, Hp) @ (Hp, n_blocks*Y) matmul.
    head = jnp.dot(c, w3_ref[...],
                   preferred_element_type=jnp.float32) + b3_ref[...]
    o_ref[...] = head.astype(o_ref.dtype)


def prepare_params(w1, b1, w2, b2, w3, b3):
    """Pad + pack parameters ONCE (hoisted out of the per-call path).

    Packed head layout: column k*Y + j  <-  head k, output feature j.
    """
    D, H = w1.shape
    n_blocks, _, Y = w3.shape
    Dp = _round_up(D, 128)
    Hp = _round_up(H, 128)
    N = n_blocks * Y
    Np = _round_up(N, 128)

    f32 = jnp.float32
    w1p = jnp.zeros((Dp, Hp), f32).at[:D, :H].set(w1.astype(f32))
    b1p = jnp.zeros((1, Hp), f32).at[0, :H].set(b1.astype(f32))
    w2p = jnp.zeros((Hp, Hp), f32).at[:H, :H].set(w2.astype(f32))
    b2p = jnp.zeros((1, Hp), f32).at[0, :H].set(b2.astype(f32))

    # (n_blocks, H, Y) -> (H, n_blocks*Y); biases packed the same way as 1-D.
    w3_packed = jnp.transpose(w3.astype(f32), (1, 0, 2)).reshape(H, N)
    b3_packed = b3.astype(f32).reshape(N)          # 1-D so it matches at[0,:N]
    w3p = jnp.zeros((Hp, Np), f32).at[:H, :N].set(w3_packed)
    b3p = jnp.zeros((1, Np), f32).at[0, :N].set(b3_packed)
    return w1p, b1p, w2p, b2p, w3p, b3p


@functools.partial(jax.jit, static_argnames=("n_blocks", "y_dim"))
def condnet_forward(x, w1p, b1p, w2p, b2p, w3p, b3p, *, n_blocks, y_dim):
    """x: (B, input_size); padded params from prepare_params().

    Returns stacked outputs of shape (n_blocks, B, y_dim).
    """
    B, D = x.shape
    Dp, Hp = w1p.shape
    Np = w3p.shape[1]
    N = n_blocks * y_dim
    Bp = _round_up(B, 8)

    # Only the activations need per-call padding.
    xp = jnp.zeros((Bp, Dp), jnp.float32).at[:B, :D].set(x.astype(jnp.float32))

    flops = 2 * Bp * (Dp * Hp + Hp * Hp + Hp * Np)
    bytes_accessed = 4 * (Bp * Dp + Dp * Hp + Hp + Hp * Hp + Hp
                          + Hp * Np + Np + Bp * Np)

    out_p = pl.pallas_call(
        condnet_kernel,
        out_shape=jax.ShapeDtypeStruct((Bp, Np), jnp.float32),
        grid_spec=pltpu.PrefetchScalarGridSpec(
            num_scalar_prefetch=0,
            grid=(1,),
            in_specs=[
                pl.BlockSpec((Bp, Dp), lambda i: (0, 0)),
                pl.BlockSpec((Dp, Hp), lambda i: (0, 0)),
                pl.BlockSpec((1, Hp), lambda i: (0, 0)),
                pl.BlockSpec((Hp, Hp), lambda i: (0, 0)),
                pl.BlockSpec((1, Hp), lambda i: (0, 0)),
                pl.BlockSpec((Hp, Np), lambda i: (0, 0)),
                pl.BlockSpec((1, Np), lambda i: (0, 0)),
            ],
            out_specs=pl.BlockSpec((Bp, Np), lambda i: (0, 0)),
        ),
        compiler_params=pltpu.CompilerParams(
            dimension_semantics=("arbitrary",),
        ),
        cost_estimate=pl.CostEstimate(
            flops=flops, transcendentals=0, bytes_accessed=bytes_accessed),
    )(xp, w1p, b1p, w2p, b2p, w3p, b3p)

    # Un-pad and split the packed heads in the wrapper (zero kernel cost).
    out = out_p[:B, :N].reshape(B, n_blocks, y_dim)
    return jnp.transpose(out, (1, 0, 2))


def init_params(key, input_size, hidden_size, n_blocks, y_dim):
    """Deterministic init mimicking torch.nn.Linear default (U[-1/sqrt(fan_in), ...])."""
    ks = jax.random.split(key, 6)

    def lin(kw, kb, fan_in, fan_out):
        bound = 1.0 / jnp.sqrt(fan_in)
        w = jax.random.uniform(kw, (fan_in, fan_out), jnp.float32, -bound, bound)
        b = jax.random.uniform(kb, (fan_out,), jnp.float32, -bound, bound)
        return w, b

    w1, b1 = lin(ks[0], ks[1], input_size, hidden_size)
    w2, b2 = lin(ks[2], ks[3], hidden_size, hidden_size)
    bound3 = 1.0 / jnp.sqrt(hidden_size)
    w3 = jax.random.uniform(ks[4], (n_blocks, hidden_size, y_dim),
                            jnp.float32, -bound3, bound3)
    b3 = jax.random.uniform(ks[5], (n_blocks, y_dim),
                            jnp.float32, -bound3, bound3)
    return w1, b1, w2, b2, w3, b3


def reference_forward(x, w1, b1, w2, b2, w3, b3):
    c = _leaky_relu(x @ w1 + b1)
    c = _leaky_relu(c @ w2 + b2)
    return jnp.stack([c @ w3[k] + b3[k] for k in range(w3.shape[0])], axis=0)


if __name__ == "__main__":
    input_size = 2
    hidden_size = 8
    n_blocks = 10
    y_dim = 64
    batch = 4

    key = jax.random.PRNGKey(0)
    kx, kp = jax.random.split(key)
    x = jax.random.normal(kx, (batch, input_size), jnp.float32)
    w1, b1, w2, b2, w3, b3 = init_params(kp, input_size, hidden_size,
                                         n_blocks, y_dim)

    # Static parameter padding/packing: done once, outside the per-call path.
    padded = prepare_params(w1, b1, w2, b2, w3, b3)
    padded = jax.block_until_ready(padded)

    out = condnet_forward(x, *padded, n_blocks=n_blocks, y_dim=y_dim)
    out = jax.block_until_ready(out)

    ref = reference_forward(x, w1, b1, w2, b2, w3, b3)
    assert out.shape == (n_blocks, batch, y_dim), out.shape
    assert jnp.allclose(out, ref, atol=1e-5, rtol=1e-5), (
        float(jnp.max(jnp.abs(out - ref))))

    # The PyTorch module returns a Python list of per-block tensors:
    outputs = [out[k] for k in range(n_blocks)]
    assert len(outputs) == n_blocks and outputs[0].shape == (batch, y_dim)

    print("KERNEL_OK")
</pallas_src>

<mosaic_0001>
module attributes {stable_mosaic.version = 11 : i64} {
  func.func @condnet_kernel(%arg0: i32, %arg1: memref<8x128xf32, #tpu.memory_space<vmem>>, %arg2: memref<128x128xf32, #tpu.memory_space<vmem>>, %arg3: memref<1x128xf32, #tpu.memory_space<vmem>>, %arg4: memref<128x128xf32, #tpu.memory_space<vmem>>, %arg5: memref<1x128xf32, #tpu.memory_space<vmem>>, %arg6: memref<128x640xf32, #tpu.memory_space<vmem>>, %arg7: memref<1x640xf32, #tpu.memory_space<vmem>>, %arg8: memref<8x640xf32, #tpu.memory_space<vmem>>) attributes {dimension_semantics = [#tpu.dimension_semantics<arbitrary>], iteration_bounds = array<i64: 1>, scalar_prefetch = 0 : i64, scratch_operands = 0 : i64, tpu.core_type = #tpu.core_type<tc>, window_params = [{pipeline_mode = #tpu.pipeline_mode<synchronous>, transform_indices = @transform_0, window_bounds = array<i64: 8, 128>}, {pipeline_mode = #tpu.pipeline_mode<synchronous>, transform_indices = @transform_1, window_bounds = array<i64: 128, 128>}, {pipeline_mode = #tpu.pipeline_mode<synchronous>, transform_indices = @transform_2, window_bounds = array<i64: 1, 128>}, {pipeline_mode = #tpu.pipeline_mode<synchronous>, transform_indices = @transform_3, window_bounds = array<i64: 128, 128>}, {pipeline_mode = #tpu.pipeline_mode<synchronous>, transform_indices = @transform_4, window_bounds = array<i64: 1, 128>}, {pipeline_mode = #tpu.pipeline_mode<synchronous>, transform_indices = @transform_5, window_bounds = array<i64: 128, 640>}, {pipeline_mode = #tpu.pipeline_mode<synchronous>, transform_indices = @transform_6, window_bounds = array<i64: 1, 640>}, {pipeline_mode = #tpu.pipeline_mode<synchronous>, transform_indices = @transform_7, window_bounds = array<i64: 8, 640>}]} {
    %c0 = arith.constant 0 : index
    %c0_0 = arith.constant 0 : index
    %0 = vector.load %arg1[%c0, %c0_0] : memref<8x128xf32, #tpu.memory_space<vmem>>, vector<8x128xf32>
    %c0_1 = arith.constant 0 : index
    %c0_2 = arith.constant 0 : index
    %1 = vector.load %arg2[%c0_1, %c0_2] : memref<128x128xf32, #tpu.memory_space<vmem>>, vector<128x128xf32>
    %cst = arith.constant dense<0.000000e+00> : vector<8x128xf32>
    %2 = tpu.matmul %0, %1, %cst {dimension_numbers = #tpu.dot_dimension_numbers<[1], [0], [0], [1], [0, 0, 1, 1], [], []>} : vector<8x128xf32>, vector<128x128xf32>, vector<8x128xf32> -> vector<8x128xf32>
    %c0_3 = arith.constant 0 : index
    %c0_4 = arith.constant 0 : index
    %3 = vector.load %arg3[%c0_3, %c0_4] : memref<1x128xf32, #tpu.memory_space<vmem>>, vector<1x128xf32>
    %4 = vector.broadcast %3 : vector<1x128xf32> to vector<8x128xf32>
    %5 = arith.addf %2, %4 : vector<8x128xf32>
    %cst_5 = arith.constant 0.000000e+00 : f32
    %6 = vector.broadcast %cst_5 : f32 to vector<8x128xf32>
    %7 = arith.cmpf oge, %5, %6 : vector<8x128xf32>
    %cst_6 = arith.constant 0.00999999977 : f32
    %8 = vector.broadcast %cst_6 : f32 to vector<8x128xf32>
    %9 = arith.mulf %8, %5 : vector<8x128xf32>
    %10 = arith.select %7, %5, %9 : vector<8x128xi1>, vector<8x128xf32>
    %c0_7 = arith.constant 0 : index
    %c0_8 = arith.constant 0 : index
    %11 = vector.load %arg4[%c0_7, %c0_8] : memref<128x128xf32, #tpu.memory_space<vmem>>, vector<128x128xf32>
    %cst_9 = arith.constant dense<0.000000e+00> : vector<8x128xf32>
    %12 = tpu.matmul %10, %11, %cst_9 {dimension_numbers = #tpu.dot_dimension_numbers<[1], [0], [0], [1], [0, 0, 1, 1], [], []>} : vector<8x128xf32>, vector<128x128xf32>, vector<8x128xf32> -> vector<8x128xf32>
    %c0_10 = arith.constant 0 : index
    %c0_11 = arith.constant 0 : index
    %13 = vector.load %arg5[%c0_10, %c0_11] : memref<1x128xf32, #tpu.memory_space<vmem>>, vector<1x128xf32>
    %14 = vector.broadcast %13 : vector<1x128xf32> to vector<8x128xf32>
    %15 = arith.addf %12, %14 : vector<8x128xf32>
    %cst_12 = arith.constant 0.000000e+00 : f32
    %16 = vector.broadcast %cst_12 : f32 to vector<8x128xf32>
    %17 = arith.cmpf oge, %15, %16 : vector<8x128xf32>
    %cst_13 = arith.constant 0.00999999977 : f32
    %18 = vector.broadcast %cst_13 : f32 to vector<8x128xf32>
    %19 = arith.mulf %18, %15 : vector<8x128xf32>
    %20 = arith.select %17, %15, %19 : vector<8x128xi1>, vector<8x128xf32>
    %c0_14 = arith.constant 0 : index
    %c0_15 = arith.constant 0 : index
    %21 = vector.load %arg6[%c0_14, %c0_15] : memref<128x640xf32, #tpu.memory_space<vmem>>, vector<128x640xf32>
    %cst_16 = arith.constant dense<0.000000e+00> : vector<8x640xf32>
    %22 = tpu.matmul %20, %21, %cst_16 {dimension_numbers = #tpu.dot_dimension_numbers<[1], [0], [0], [1], [0, 0, 1, 1], [], []>} : vector<8x128xf32>, vector<128x640xf32>, vector<8x640xf32> -> vector<8x640xf32>
    %c0_17 = arith.constant 0 : index
    %c0_18 = arith.constant 0 : index
    %23 = vector.load %arg7[%c0_17, %c0_18] : memref<1x640xf32, #tpu.memory_space<vmem>>, vector<1x640xf32>
    %24 = vector.broadcast %23 : vector<1x640xf32> to vector<8x640xf32>
    %25 = arith.addf %22, %24 : vector<8x640xf32>
    %c0_19 = arith.constant 0 : index
    %c0_20 = arith.constant 0 : index
    %26 = vector.load %arg8[%c0_19, %c0_20] : memref<8x640xf32, #tpu.memory_space<vmem>>, vector<8x640xf32>
    tpu.vector_store %arg8[%c0_19, %c0_20], %25 {strides = array<i32>} : memref<8x640xf32, #tpu.memory_space<vmem>>, vector<8x640xf32>,
    return
  }
  func.func @transform_0(%arg0: i32) -> (i32, i32) {
    %c0_i32 = arith.constant 0 : i32
    %c0_i32_0 = arith.constant 0 : i32
    %c0_i32_1 = arith.constant 0 : i32
    return %c0_i32, %c0_i32_0 : i32, i32
  }
  func.func @transform_1(%arg0: i32) -> (i32, i32) {
    %c0_i32 = arith.constant 0 : i32
    %c0_i32_0 = arith.constant 0 : i32
    %c0_i32_1 = arith.constant 0 : i32
    return %c0_i32, %c0_i32_0 : i32, i32
  }
  func.func @transform_2(%arg0: i32) -> (i32, i32) {
    %c0_i32 = arith.constant 0 : i32
    %c0_i32_0 = arith.constant 0 : i32
    %c0_i32_1 = arith.constant 0 : i32
    return %c0_i32, %c0_i32_0 : i32, i32
  }
  func.func @transform_3(%arg0: i32) -> (i32, i32) {
    %c0_i32 = arith.constant 0 : i32
    %c0_i32_0 = arith.constant 0 : i32
    %c0_i32_1 = arith.constant 0 : i32
    return %c0_i32, %c0_i32_0 : i32, i32
  }
  func.func @transform_4(%arg0: i32) -> (i32, i32) {
    %c0_i32 = arith.constant 0 : i32
    %c0_i32_0 = arith.constant 0 : i32
    %c0_i32_1 = arith.constant 0 : i32
    return %c0_i32, %c0_i32_0 : i32, i32
  }
  func.func @transform_5(%arg0: i32) -> (i32, i32) {
    %c0_i32 = arith.constant 0 : i32
    %c0_i32_0 = arith.constant 0 : i32
    %c0_i32_1 = arith.constant 0 : i32
    return %c0_i32, %c0_i32_0 : i32, i32
  }
  func.func @transform_6(%arg0: i32) -> (i32, i32) {
    %c0_i32 = arith.constant 0 : i32
    %c0_i32_0 = arith.constant 0 : i32
    %c0_i32_1 = arith.constant 0 : i32
    return %c0_i32, %c0_i32_0 : i32, i32
  }
  func.func @transform_7(%arg0: i32) -> (i32, i32) {
    %c0_i32 = arith.constant 0 : i32
    %c0_i32_0 = arith.constant 0 : i32
    %c0_i32_1 = arith.constant 0 : i32
    return %c0_i32, %c0_i32_0 : i32, i32
  }
}

</mosaic_0001>

<bundles_post_ra>
// kernel: condnet_forward.1
= control target key start
LH: loop header
LB: loop body
LE: loop exit
PB: predicated region body
PF: predicated region fallthrough
CT: control target
= control target key end

     0   :  { %12 = vsyncpa [#allocation3], 0  ;;  %s1116_s0 = inlined_call_operand.vmem [shape: f32[8,128], index: 0, kind: input, shape index: {}]   ;;  %s1117_s1 = inlined_call_operand.hbm [shape: f32[128,128], index: 1, kind: input, shape index: {}]   ;;  %s1118_s2 = inlined_call_operand.vmem [shape: f32[1,128], index: 2, kind: input, shape index: {}]   ;;  %s1119_s3 = inlined_call_operand.hbm [shape: f32[128,128], index: 3, kind: input, shape index: {}]   ;;  %s1120_s4 = inlined_call_operand.vmem [shape: f32[1,128], index: 4, kind: input, shape index: {}]   ;;  %s1121_s5 = inlined_call_operand.hbm [shape: f32[128,640], index: 5, kind: input, shape index: {}]   ;;  %s1122_s6 = inlined_call_operand.vmem [shape: f32[1,640], index: 6, kind: input, shape index: {}]   ;;  %s1123_s7 = inlined_call_operand.vmem [shape: f32[8,640], index: 7, kind: output, shape index: {}]  }
   0x1   :  { %13 = vsyncpa [#allocation5], 0  ;;  %s964_s24 = smov [#allocation4]   ;;  %s965_s26 = smov [#allocation2]  }
   0x2   :  { %s35_s25 = sshll.u32 %s964_s24, 4  ;;  %s21_s27 = sshll.u32 %s965_s26, 4  ;;  %s36_s25 = int_to_ptr.vmem [resolvable:$true] %s35_s25  ;;  %s1014_s27 = int_to_ptr.vmem [resolvable:$true] %s21_s27 }
   0x3   :  { %s894_s30 = scalar_lea.hbm %s1119_s3, 2048 }
   0x4   :  { %p895_p0 = scmp.ne.s32.totalorder %s1119_s3, %s894_s30  ;;  %p898_p1 = scmp.lt.u32.totalorder %s894_s30, %s1119_s3 }
   0x6   :  { %p900_p2 = pnand %p898_p1, %p895_p0 }
   0x8   :  { %903 = shalt.err (!%p900_p2)
}
   0x9   :  { %s904_s12 = scalar_lea.vmem %s36_s25, 2048  ;;  %p909_p4 = scmp.lt.s32.totalorder %s36_s25, %s36_s25 }
   0xa   :  { %p905_p3 = scmp.ne.s32.totalorder %s36_s25, %s904_s12  ;;  %p910_p5 = scmp.lt.s32.totalorder %s904_s12, %s904_s12 }
   0xc   :  { %p911_p6 = por %p910_p5, %p909_p4 }
   0xe   :  { %p912_p7 = pnand %p911_p6, %p905_p3 }
  0x10   :  { %915 = shalt.err (!%p912_p7)
}
  0x11   :  { %s966_s13 = smov 128   ;;  %s967_s14 = smov 8  }
  0x12   :  { %41 = dma.hbm_to_vmem [thread:$0]  %s1119_s3, 2048, %s36_s25, [#allocation5], %s966_s13, %s966_s13, %s967_s14  }
  0x13   :  { %s916_s19 = scalar_lea.hbm %s1117_s1, 2048 }
  0x14   :  { %p917_p8 = scmp.ne.s32.totalorder %s1117_s1, %s916_s19  ;;  %p920_p9 = scmp.lt.u32.totalorder %s916_s19, %s1117_s1 }
  0x16   :  { %p922_p10 = pnand %p920_p9, %p917_p8 }
  0x18   :  { %925 = shalt.err (!%p922_p10)
}
  0x19   :  { %s926_s24 = scalar_lea.vmem %s1014_s27, 2048  ;;  %p931_p12 = scmp.lt.s32.totalorder %s1014_s27, %s1014_s27 }
  0x1a   :  { %p927_p11 = scmp.ne.s32.totalorder %s1014_s27, %s926_s24  ;;  %p932_p13 = scmp.lt.s32.totalorder %s926_s24, %s926_s24 }
  0x1c   :  { %p933_p0 = por %p932_p13, %p931_p12 }
  0x1e   :  { %p934_p1 = pnand %p933_p0, %p927_p11 }
  0x20   :  { %937 = shalt.err (!%p934_p1)
}
  0x21   :  { %27 = dma.hbm_to_vmem [thread:$0]  %s1117_s1, 2048, %s1014_s27, [#allocation3], %s966_s13, %s966_s13, %s967_s14  }
  0x22   :  { %s968_s26 = smov [#allocation6]   ;;  %s938_s8 = scalar_lea.hbm %s1121_s5, 10240 }
  0x23   :  { %s49_s28 = sshll.u32 %s968_s26, 4  ;;  %p939_p2 = scmp.ne.s32.totalorder %s1121_s5, %s938_s8  ;;  %s50_s28 = int_to_ptr.vmem [resolvable:$true] %s49_s28 }
  0x24   :  { %p942_p3 = scmp.lt.u32.totalorder %s938_s8, %s1121_s5 }
  0x26   :  { %p944_p4 = pnand %p942_p3, %p939_p2 }
  0x28   :  { %947 = shalt.err (!%p944_p4)
}
  0x29   :  { %s948_s15 = scalar_lea.vmem %s50_s28, 10240  ;;  %p953_p6 = scmp.lt.s32.totalorder %s50_s28, %s50_s28 }
  0x2a   :  { %p949_p5 = scmp.ne.s32.totalorder %s50_s28, %s948_s15  ;;  %p954_p7 = scmp.lt.s32.totalorder %s948_s15, %s948_s15 }
  0x2c   :  { %p955_p8 = por %p954_p7, %p953_p6 }
  0x2e   :  { %p956_p9 = pnand %p955_p8, %p949_p5 }
  0x30   :  { %959 = shalt.err (!%p956_p9)
}
  0x31   :  { %s969_s1 = smov 640   ;;  %s970_s27 = smov 40  }
  0x32   :  { %55 = dma.hbm_to_vmem [thread:$0]  %s1121_s5, 10240, %s50_s28, [#allocation5], %s969_s1, %s969_s1, %s970_s27  }
  0x33   :  { %960 = dma.done.wait [#allocation3], 2048  }
  0x34   :  { %961 = vsyncadd [#allocation3], 4294965248 }
  0x35   :  { %962 = dma.done.wait [#allocation5], 12288  }
  0x36   :  { %963 = vsyncadd [#allocation5], 4294955008  ;;  %v971_v0 = vmov 0.0|0.0   ;;  %vm972_vm0 = vmmov 0   ;;  %v973_v1 = vmov 0.0   ;;  %v68_v2 = vld [vmem:[#allocation2] sm:$0xff] }
  0x37   :  { %748 = vmatprep.subr.bf16.mxu0 %v971_v0  ;;  %675 = vmatprep.mubr.msk.f32.mxu0 %vm972_vm0, %v973_v1  ;;  %v69_v3 = vld [vmem:[#allocation2 + $0x8] sm:$0xff]  ;;  %v70_v4 = vld [vmem:[#allocation2 + $0x10] sm:$0xff]  ;;  %v71_v6 = vld [vmem:[#allocation2 + $0x18] sm:$0xff] }
  0x38   :  { %772 = vmatprep.subr.bf16.mxu1 %v971_v0  ;;  %710 = vmatprep.mubr.msk.f32.mxu1 %vm972_vm0, %v973_v1  ;;  %v749_v5 = vpack.c.bf16 %v69_v3, %v68_v2  ;;  %v752_v7 = vpack.c.bf16 %v71_v6, %v70_v4  ;;  %v72_v8 = vld [vmem:[#allocation2 + $0x20] sm:$0xff]  ;;  %v73_v9 = vld [vmem:[#allocation2 + $0x28] sm:$0xff]  ;;  %v166_v12 = vld [vmem:[#allocation4 + $0x10] sm:$0xff] }
  0x39   :  { %v164_v10 = vld [vmem:[#allocation4] sm:$0xff]  ;;  %v165_v11 = vld [vmem:[#allocation4 + $0x8] sm:$0xff]  ;;  %v167_v13 = vld [vmem:[#allocation4 + $0x18] sm:$0xff]  ;;  %v755_v14 = vpack.c.bf16 %v73_v9, %v72_v8 }
  0x3a   :  { %750 = vmatpush3.bf16.msra.mxu0 %v749_v5  ;;  %v773_v15 = vpack.c.bf16 %v165_v11, %v164_v10  ;;  %v74_v16 = vld [vmem:[#allocation2 + $0x30] sm:$0xff]  ;;  %v75_v17 = vld [vmem:[#allocation2 + $0x38] sm:$0xff]  ;;  %v776_v18 = vpack.c.bf16 %v167_v13, %v166_v12  ;;  %v168_v19 = vld [vmem:[#allocation4 + $0x20] sm:$0xff] }
  0x3b   :  { %751 = vmatprep.subr.bf16.mxu0 %v971_v0  ;;  %v169_v20 = vld [vmem:[#allocation4 + $0x28] sm:$0xff]  ;;  %v758_v21 = vpack.c.bf16 %v75_v17, %v74_v16  ;;  %v76_v22 = vld [vmem:[#allocation2 + $0x40] sm:$0xff]  ;;  %v170_v25 = vld [vmem:[#allocation4 + $0x30] sm:$0xff] }
  0x3c   :  { %774 = vmatpush3.bf16.msra.mxu1 %v773_v15  ;;  %v77_v23 = vld [vmem:[#allocation2 + $0x48] sm:$0xff]  ;;  %v779_v24 = vpack.c.bf16 %v169_v20, %v168_v19  ;;  %v171_v26 = vld [vmem:[#allocation4 + $0x38] sm:$0xff]  ;;  %v78_v28 = vld [vmem:[#allocation2 + $0x50] sm:$0xff] }
  0x3d   :  { %775 = vmatprep.subr.bf16.mxu1 %v971_v0  ;;  %v761_v27 = vpack.c.bf16 %v77_v23, %v76_v22  ;;  %v79_v29 = vld [vmem:[#allocation2 + $0x58] sm:$0xff]  ;;  %v782_v30 = vpack.c.bf16 %v171_v26, %v170_v25  ;;  %v172_v31 = vld [vmem:[#allocation4 + $0x40] sm:$0xff]  ;;  %v173_v32 = vld [vmem:[#allocation4 + $0x48] sm:$0xff] }
  0x3e   :  { %753 = vmatpush3.bf16.msra.mxu0 %v752_v7  ;;  %v764_v33 = vpack.c.bf16 %v79_v29, %v78_v28  ;;  %v80_v34 = vld [vmem:[#allocation2 + $0x60] sm:$0xff]  ;;  %v81_v35 = vld [vmem:[#allocation2 + $0x68] sm:$0xff]  ;;  %v785_v36 = vpack.c.bf16 %v173_v32, %v172_v31  ;;  %v174_v37 = vld [vmem:[#allocation4 + $0x50] sm:$0xff] }
  0x3f   :  { %754 = vmatprep.subr.bf16.mxu0 %v971_v0  ;;  %v175_v38 = vld [vmem:[#allocation4 + $0x58] sm:$0xff]  ;;  %v767_v39 = vpack.c.bf16 %v81_v35, %v80_v34  ;;  %v82_v40 = vld [vmem:[#allocation2 + $0x70] sm:$0xff]  ;;  %v176_v43 = vld [vmem:[#allocation4 + $0x60] sm:$0xff] }
  0x40   :  { %777 = vmatpush3.bf16.msra.mxu1 %v776_v18  ;;  %v83_v41 = vld [vmem:[#allocation2 + $0x78] sm:$0xff]  ;;  %v788_v42 = vpack.c.bf16 %v175_v38, %v174_v37  ;;  %v177_v44 = vld [vmem:[#allocation4 + $0x68] sm:$0xff]  ;;  %v67_v47 = vld [vmem:[%s1116_s0] sm:$0xff] }
  0x41   :  { %778 = vmatprep.subr.bf16.mxu1 %v971_v0  ;;  %v770_v45 = vpack.c.bf16 %v83_v41, %v82_v40  ;;  %v791_v46 = vpack.c.bf16 %v177_v44, %v176_v43  ;;  %v178_v48 = vld [vmem:[#allocation4 + $0x70] sm:$0xff]  ;;  %v179_v49 = vld [vmem:[#allocation4 + $0x78] sm:$0xff]  ;;  %v261_v51 = vld [vmem:[#allocation6 + $0x8] sm:$0xff] }
  0x42   :  { %756 = vmatpush3.bf16.msra.mxu0 %v755_v14  ;;  %v794_v50 = vpack.c.bf16 %v179_v49, %v178_v48  ;;  %v266_v52 = vld [vmem:[#allocation6 + $0x30] sm:$0xff]  ;;  %v260_v53 = vld [vmem:[#allocation6] sm:$0xff]  ;;  %v265_v55 = vld [vmem:[#allocation6 + $0x28] sm:$0xff] }
  0x43   :  { %757 = vmatprep.subr.bf16.mxu0 %v971_v0  ;;  %v796_v54 = vpack.c.bf16 %v266_v52, %v261_v51  ;;  %v263_v56 = vld [vmem:[#allocation6 + $0x18] sm:$0xff]  ;;  %v268_v57 = vld [vmem:[#allocation6 + $0x40] sm:$0xff]  ;;  %v798_v58 = vpack.c.bf16 %v265_v55, %v260_v53  ;;  %v270_v62 = vld [vmem:[#allocation6 + $0x50] sm:$0xff] }
  0x44   :  { %780 = vmatpush3.bf16.msra.mxu1 %v779_v24  ;;  %v828_v59 = vpack.c.bf16 %v268_v57, %v263_v56  ;;  %v271_v60 = vld [vmem:[#allocation6 + $0x58] sm:$0xff]  ;;  %v276_v61 = vld [vmem:[#allocation6 + $0x80] sm:$0xff]  ;;  %v281_v4 = vld [vmem:[#allocation6 + $0xa8] sm:$0xff] }
  0x45   :  { %781 = vmatprep.subr.bf16.mxu1 %v971_v0  ;;  %v275_v63 = vld [vmem:[#allocation6 + $0x78] sm:$0xff]  ;;  %v800_v2 = vpack.c.bf16 %v276_v61, %v271_v60  ;;  %v286_v5 = vld [vmem:[#allocation6 + $0xd0] sm:$0xff]  ;;  %v280_v7 = vld [vmem:[#allocation6 + $0xa0] sm:$0xff] }
  0x46   :  { %759 = vmatpush3.bf16.msra.mxu0 %v758_v21  ;;  %v802_v3 = vpack.c.bf16 %v275_v63, %v270_v62  ;;  %v804_v6 = vpack.c.bf16 %v286_v5, %v281_v4  ;;  %v285_v8 = vld [vmem:[#allocation6 + $0xc8] sm:$0xff]  ;;  %v291_v10 = vld [vmem:[#allocation6 + $0xf8] sm:$0xff]  ;;  %v296_v11 = vld [vmem:[#allocation6 + $0x120] sm:$0xff] }
  0x47   :  { %760 = vmatprep.subr.bf16.mxu0 %v971_v0  ;;  %v806_v9 = vpack.c.bf16 %v285_v8, %v280_v7  ;;  %v290_v12 = vld [vmem:[#allocation6 + $0xf0] sm:$0xff]  ;;  %v808_v13 = vpack.c.bf16 %v296_v11, %v291_v10  ;;  %v295_v14 = vld [vmem:[#allocation6 + $0x118] sm:$0xff]  ;;  %v301_v16 = vld [vmem:[#allocation6 + $0x148] sm:$0xff] }
  0x48   :  { %783 = vmatpush3.bf16.msra.mxu1 %v782_v30  ;;  %v810_v15 = vpack.c.bf16 %v295_v14, %v290_v12  ;;  %v306_v17 = vld [vmem:[#allocation6 + $0x170] sm:$0xff]  ;;  %v300_v18 = vld [vmem:[#allocation6 + $0x140] sm:$0xff]  ;;  %v305_v20 = vld [vmem:[#allocation6 + $0x168] sm:$0xff] }
  0x49   :  { %784 = vmatprep.subr.bf16.mxu1 %v971_v0  ;;  %v812_v19 = vpack.c.bf16 %v306_v17, %v301_v16  ;;  %v814_v21 = vpack.c.bf16 %v305_v20, %v300_v18  ;;  %v311_v22 = vld [vmem:[#allocation6 + $0x198] sm:$0xff]  ;;  %v316_v23 = vld [vmem:[#allocation6 + $0x1c0] sm:$0xff]  ;;  %v310_v24 = vld [vmem:[#allocation6 + $0x190] sm:$0xff] }
  0x4a   :  { %762 = vmatpush3.bf16.msra.mxu0 %v761_v27  ;;  %v816_v25 = vpack.c.bf16 %v316_v23, %v311_v22  ;;  %v315_v26 = vld [vmem:[#allocation6 + $0x1b8] sm:$0xff]  ;;  %v321_v28 = vld [vmem:[#allocation6 + $0x1e8] sm:$0xff]  ;;  %v326_v29 = vld [vmem:[#allocation6 + $0x210] sm:$0xff] }
  0x4b   :  { %763 = vmatprep.subr.bf16.mxu0 %v971_v0  ;;  %v818_v27 = vpack.c.bf16 %v315_v26, %v310_v24  ;;  %v320_v30 = vld [vmem:[#allocation6 + $0x1e0] sm:$0xff]  ;;  %v820_v31 = vpack.c.bf16 %v326_v29, %v321_v28  ;;  %v325_v32 = vld [vmem:[#allocation6 + $0x208] sm:$0xff]  ;;  %v267_v37 = vld [vmem:[#allocation6 + $0x38] sm:$0xff] }
  0x4c   :  { %786 = vmatpush3.bf16.msra.mxu1 %v785_v36  ;;  %v590_v34 = vld [vmem:[%s1118_s2] ss:$0 sm:$0xff]  ;;  %v262_v36 = vld [vmem:[#allocation6 + $0x10] sm:$0xff]  ;;  %v273_v40 = vld [vmem:[#allocation6 + $0x68] sm:$0xff] }
  0x4d   :  { %787 = vmatprep.subr.bf16.mxu1 %v971_v0  ;;  %v278_v41 = vld [vmem:[#allocation6 + $0x90] sm:$0xff]  ;;  %v830_v43 = vpack.c.bf16 %v267_v37, %v262_v36  ;;  %v283_v48 = vld [vmem:[#allocation6 + $0xb8] sm:$0xff]  ;;  %v288_v49 = vld [vmem:[#allocation6 + $0xe0] sm:$0xff] }
  0x4e   :  { %765 = vmatpush3.bf16.msra.mxu0 %v764_v33  ;;  %v822_v33 = vpack.c.bf16 %v325_v32, %v320_v30  ;;  %v832_v44 = vpack.c.bf16 %v278_v41, %v273_v40  ;;  %v836_v51 = vpack.c.bf16 %v288_v49, %v283_v48  ;;  %v282_v52 = vld [vmem:[#allocation6 + $0xb0] sm:$0xff]  ;;  %v287_v53 = vld [vmem:[#allocation6 + $0xd8] sm:$0xff]  ;;  %v308_v61 = vld [vmem:[#allocation6 + $0x180] sm:$0xff] }
  0x4f   :  { %766 = vmatprep.subr.bf16.mxu0 %v971_v0  ;;  %v298_v55 = vld [vmem:[#allocation6 + $0x130] sm:$0xff]  ;;  %v838_v56 = vpack.c.bf16 %v287_v53, %v282_v52  ;;  %v303_v60 = vld [vmem:[#allocation6 + $0x158] sm:$0xff]  ;;  %v313_v4 = vld [vmem:[#allocation6 + $0x1a8] sm:$0xff] }
  0x50   :  { %789 = vmatpush3.bf16.msra.mxu1 %v788_v42  ;;  %v844_v63 = vpack.c.bf16 %v308_v61, %v303_v60  ;;  %v318_v5 = vld [vmem:[#allocation6 + $0x1d0] sm:$0xff]  ;;  %v312_v8 = vld [vmem:[#allocation6 + $0x1a0] sm:$0xff]  ;;  %v323_v10 = vld [vmem:[#allocation6 + $0x1f8] sm:$0xff] }
  0x51   :  { %790 = vmatprep.subr.bf16.mxu1 %v971_v0  ;;  %v848_v7 = vpack.c.bf16 %v318_v5, %v313_v4  ;;  %v328_v11 = vld [vmem:[#allocation6 + $0x220] sm:$0xff]  ;;  %v322_v14 = vld [vmem:[#allocation6 + $0x1f0] sm:$0xff]  ;;  %v331_v17 = vld [vmem:[#allocation6 + $0x238] sm:$0xff] }
  0x52   :  { %768 = vmatpush3.bf16.msra.mxu0 %v767_v39  ;;  %v336_v18 = vld [vmem:[#allocation6 + $0x260] sm:$0xff]  ;;  %v330_v20 = vld [vmem:[#allocation6 + $0x230] sm:$0xff]  ;;  %v333_v22 = vld [vmem:[#allocation6 + $0x248] sm:$0xff] }
  0x53   :  { %769 = vmatprep.subr.bf16.mxu0 %v971_v0  ;;  %v338_v24 = vld [vmem:[#allocation6 + $0x270] sm:$0xff]  ;;  %v337_v26 = vld [vmem:[#allocation6 + $0x268] sm:$0xff]  ;;  %v591_v29 = vld [vmem:[%s1120_s4] ss:$0 sm:$0xff] }
  0x54   :  { %792 = vmatpush3.bf16.msra.mxu1 %v791_v46  ;;  %v277_v46 = vld [vmem:[#allocation6 + $0x88] sm:$0xff]  ;;  %v274_v37 = vld [vmem:[#allocation6 + $0x70] sm:$0xff]  ;;  %v284_v41 = vld [vmem:[#allocation6 + $0xc0] sm:$0xff] }
  0x55   :  { %793 = vmatprep.subr.bf16.mxu1 %v971_v0  ;;  %v269_v32 = vld [vmem:[#allocation6 + $0x48] sm:$0xff]  ;;  %v324_v52 = vld [vmem:[#allocation6 + $0x200] sm:$0xff] }
  0x56   :  { %771 = vmatpush3.bf16.msra.mxu0 %v770_v45  ;;  %v272_v45 = vld [vmem:[#allocation6 + $0x60] sm:$0xff]  ;;  %v309_v48 = vld [vmem:[#allocation6 + $0x188] sm:$0xff] }
  0x57   :  { %797 = vmatprep.subr.bf16.mxu0 %v796_v54  ;;  %v293_v54 = vld [vmem:[#allocation6 + $0x108] sm:$0xff] }
  0x58   :  { %795 = vmatpush3.bf16.msra.mxu1 %v794_v50  ;;  %v834_v50 = vpack.c.bf16 %v277_v46, %v272_v45  ;;  %v840_v57 = vpack.c.bf16 %v298_v55, %v293_v54  ;;  %v299_v45 = vld [vmem:[#allocation6 + $0x138] sm:$0xff]  ;;  %v329_v53 = vld [vmem:[#allocation6 + $0x228] sm:$0xff]  ;;  %v334_v55 = vld [vmem:[#allocation6 + $0x250] sm:$0xff] }
  0x59   :  { %676 = vmatmul.mubr.f32.vlgmr.msra.gmra.mrb[0].mxu0 %v67_v47  ;;  %829 = vmatprep.subr.bf16.mxu1 %v828_v59  ;;  %v297_v59 = vld [vmem:[#allocation6 + $0x128] sm:$0xff]  ;;  %v879_v54 = vpack.c.bf16 %v329_v53, %v324_v52 }
  0x5a   :  { %431 = vmatprep.mubr.f32.mxu0 %v973_v1  ;;  %799 = vmatpush1.bf16.msra.mxu0 %v798_v58  ;;  %v292_v58 = vld [vmem:[#allocation6 + $0x100] sm:$0xff] }
  0x5b   :  { %801 = vmatprep.subr.bf16.mxu0 %v800_v2  ;;  %v842_v62 = vpack.c.bf16 %v297_v59, %v292_v58  ;;  %v302_v2 = vld [vmem:[#allocation6 + $0x150] sm:$0xff]  ;;  %v342_v58 = vlaneseq }
  0x5d   :  { %v343_v59 = vshrl.u32 %v342_v58, 7 }
  0x5e   :  { %803 = vmatpush1.bf16.msra.mxu0 %v802_v3  ;;  %v307_v3 = vld [vmem:[#allocation6 + $0x178] sm:$0xff] }
  0x5f   :  { %805 = vmatprep.subr.bf16.mxu0 %v804_v6  ;;  %v846_v6 = vpack.c.bf16 %v307_v3, %v302_v2  ;;  %v344_v60 = vsub.s32 0, %v343_v59  ;;  %v352_v61 = vsub.s32 2, %v343_v59  ;;  %v356_v2 = vsub.s32 3, %v343_v59 }
  0x62   :  { %807 = vmatpush1.bf16.msra.mxu0 %v806_v9  ;;  %v317_v9 = vld [vmem:[#allocation6 + $0x1c8] sm:$0xff] }
  0x63   :  { %809 = vmatprep.subr.bf16.mxu0 %v808_v13  ;;  %v850_v12 = vpack.c.bf16 %v317_v9, %v312_v8  ;;  %v852_v13 = vpack.c.bf16 %v328_v11, %v323_v10 }
  0x66   :  { %811 = vmatpush1.bf16.msra.mxu0 %v810_v15  ;;  %v327_v15 = vld [vmem:[#allocation6 + $0x218] sm:$0xff] }
  0x67   :  { %813 = vmatprep.subr.bf16.mxu0 %v812_v19  ;;  %v854_v16 = vpack.c.bf16 %v327_v15, %v322_v14  ;;  %v824_v19 = vpack.c.bf16 %v336_v18, %v331_v17  ;;  %v360_v14 = vsub.s32 4, %v343_v59 }
  0x6a   :  { %815 = vmatpush1.bf16.msra.mxu0 %v814_v21  ;;  %v335_v21 = vld [vmem:[#allocation6 + $0x258] sm:$0xff] }
  0x6b   :  { %817 = vmatprep.subr.bf16.mxu0 %v816_v25  ;;  %v826_v23 = vpack.c.bf16 %v335_v21, %v330_v20  ;;  %v332_v25 = vld [vmem:[#allocation6 + $0x240] sm:$0xff] }
  0x6c   :  { %v858_v28 = vpack.c.bf16 %v337_v26, %v332_v25 }
  0x6e   :  { %819 = vmatpush1.bf16.msra.mxu0 %v818_v27  ;;  %v856_v27 = vpack.c.bf16 %v338_v24, %v333_v22 }
  0x6f   :  { %821 = vmatprep.subr.bf16.mxu0 %v820_v31  ;;  %v264_v31 = vld [vmem:[#allocation6 + $0x20] sm:$0xff] }
  0x70   :  { %v861_v36 = vpack.c.bf16 %v269_v32, %v264_v31 }
  0x72   :  { %823 = vmatpush1.bf16.msra.mxu0 %v822_v33 }
  0x73   :  { %825 = vmatprep.subr.bf16.mxu0 %v824_v19 }
  0x76   :  { %827 = vmatpush1.bf16.msra.mxu0 %v826_v23 }
  0x77   :  { %860 = vmatprep.subr.bf16.mxu0 %v971_v0 }
 0x12c   :  { %v157_v35 = vpop.f32.mrb[0].mxu0 }
 0x12d   :  { %v158_v38 = vadd.f32 %v590_v34, %v157_v35  ;;  %v677_v39 = vpop.f32.mrb[1].mxu0 }
 0x12f   :  { %v162_v42 = vmul.f32 0.01, %v158_v38  ;;  %vm161_vm1 = vcmp.ge.f32.partialorder %v158_v38, 0.0 }
 0x131   :  { %v163_v47 = vsel %vm161_vm1, %v158_v38, %v162_v42  ;;  %v279_v38 = vld [vmem:[#allocation6 + $0x98] sm:$0xff]  ;;  %v289_v42 = vld [vmem:[#allocation6 + $0xe8] sm:$0xff] }
 0x132   :  { %711 = vmatmul.mubr.f32.vlgmr.msra.gmra.mrb[0].mxu1 %v163_v47  ;;  %v864_v40 = vpack.c.bf16 %v279_v38, %v274_v37  ;;  %v304_v47 = vld [vmem:[#allocation6 + $0x160] sm:$0xff] }
 0x133   :  { %831 = vmatpush1.bf16.msra.mxu1 %v830_v43  ;;  %502 = vmatprep.mubr.f32.mxu1 %v973_v1  ;;  %v867_v43 = vpack.c.bf16 %v289_v42, %v284_v41  ;;  %v873_v49 = vpack.c.bf16 %v309_v48, %v304_v47 }
 0x134   :  { %833 = vmatprep.subr.bf16.mxu1 %v832_v44  ;;  %v294_v44 = vld [vmem:[#allocation6 + $0x110] sm:$0xff] }
 0x135   :  { %v870_v46 = vpack.c.bf16 %v299_v45, %v294_v44 }
 0x137   :  { %835 = vmatpush1.bf16.msra.mxu1 %v834_v50  ;;  %v319_v50 = vld [vmem:[#allocation6 + $0x1d8] sm:$0xff] }
 0x138   :  { %837 = vmatprep.subr.bf16.mxu1 %v836_v51 }
 0x13b   :  { %839 = vmatpush1.bf16.msra.mxu1 %v838_v56  ;;  %v339_v56 = vld [vmem:[#allocation6 + $0x278] sm:$0xff] }
 0x13c   :  { %841 = vmatprep.subr.bf16.mxu1 %v840_v57  ;;  %v882_v57 = vpack.c.bf16 %v339_v56, %v334_v55 }
 0x13f   :  { %843 = vmatpush1.bf16.msra.mxu1 %v842_v62  ;;  %v340_v62 = vld [vmem:[%s1122_s6] sm:$0x1f] }
 0x140   :  { %845 = vmatprep.subr.bf16.mxu1 %v844_v63  ;;  %v348_v63 = vsub.s32 1, %v343_v59  ;;  %v345_v3 = vrot.slane %v340_v62, %v344_v60  ;;  %v353_v4 = vrot.slane %v340_v62, %v352_v61  ;;  %v361_v15 = vrot.slane %v340_v62, %v360_v14 }
 0x142   :  { %v349_v5 = vrot.slane %v340_v62, %v348_v63 }
 0x143   :  { %847 = vmatpush1.bf16.msra.mxu1 %v846_v6  ;;  %v357_v6 = vrot.slane %v340_v62, %v356_v2 }
 0x144   :  { %849 = vmatprep.subr.bf16.mxu1 %v848_v7 }
 0x147   :  { %851 = vmatpush1.bf16.msra.mxu1 %v850_v12 }
 0x148   :  { %853 = vmatprep.subr.bf16.mxu1 %v852_v13 }
 0x14b   :  { %855 = vmatpush1.bf16.msra.mxu1 %v854_v16 }
 0x14c   :  { %857 = vmatprep.subr.bf16.mxu1 %v856_v27 }
 0x14f   :  { %859 = vmatpush1.bf16.msra.mxu1 %v858_v28 }
 0x205   :  { %v253_v30 = vpop.f32.mrb[0].mxu1 }
 0x206   :  { %v254_v33 = vadd.f32 %v591_v29, %v253_v30  ;;  %v712_v34 = vpop.f32.mrb[1].mxu1 }
 0x208   :  { %vm257_vm2 = vcmp.ge.f32.partialorder %v254_v33, 0.0  ;;  %v258_v35 = vmul.f32 0.01, %v254_v33 }
 0x20a   :  { %v259_v39 = vsel %vm257_vm2, %v254_v33, %v258_v35 }
 0x20b   :  { %432 = vmatmul.mubr.f32.vlgmr.msra.gmra.mrb[2].mxu0 %v259_v39  ;;  %503 = vmatmul.mubr.f32.vlgmr.msra.gmra.mrb[2].mxu1 %v259_v39 }
 0x20c   :  { %862 = vmatpush3.bf16.msra.mxu0 %v861_v36  ;;  %745 = vmatprep.mubr.msk.f32.mxu0 %vm972_vm0, %v973_v1  ;;  %v314_v1 = vld [vmem:[#allocation6 + $0x1b0] sm:$0xff] }
 0x20d   :  { %863 = vmatprep.subr.bf16.mxu0 %v971_v0  ;;  %v876_v51 = vpack.c.bf16 %v319_v50, %v314_v1 }
 0x210   :  { %865 = vmatpush3.bf16.msra.mxu0 %v864_v40 }
 0x211   :  { %866 = vmatprep.subr.bf16.mxu0 %v971_v0 }
 0x214   :  { %868 = vmatpush3.bf16.msra.mxu0 %v867_v43 }
 0x215   :  { %869 = vmatprep.subr.bf16.mxu0 %v971_v0 }
 0x218   :  { %871 = vmatpush3.bf16.msra.mxu0 %v870_v46 }
 0x219   :  { %872 = vmatprep.subr.bf16.mxu0 %v971_v0 }
 0x21c   :  { %874 = vmatpush3.bf16.msra.mxu0 %v873_v49 }
 0x21d   :  { %875 = vmatprep.subr.bf16.mxu0 %v971_v0 }
 0x220   :  { %877 = vmatpush3.bf16.msra.mxu0 %v876_v51 }
 0x221   :  { %878 = vmatprep.subr.bf16.mxu0 %v971_v0 }
 0x224   :  { %880 = vmatpush3.bf16.msra.mxu0 %v879_v54 }
 0x225   :  { %881 = vmatprep.subr.bf16.mxu0 %v971_v0 }
 0x228   :  { %883 = vmatpush3.bf16.msra.mxu0 %v882_v57 }
 0x22b   :  { %746 = vmatmul.mubr.f32.vlgmr.msra.gmra.mrb[4].mxu0 %v259_v39 }
 0x2de   :  { %v433_v7 = vpop.f32.mrb[2].mxu0  ;;  %v504_v8 = vpop.f32.mrb[2].mxu1 }
 0x2df   :  { %v434_v9 = vadd.f32 %v433_v7, %v345_v3  ;;  %v505_v0 = vadd.f32 %v504_v8, %v353_v4  ;;  %v435_v10 = vpop.f32.mrb[3].mxu0  ;;  %v506_v11 = vpop.f32.mrb[3].mxu1 }
 0x2e0   :  { %v436_v12 = vadd.f32 %v435_v10, %v349_v5  ;;  %v507_v13 = vadd.f32 %v506_v11, %v357_v6 }
 0x2e1   :  { %579 = vst [vmem:[%s1123_s7] sm:$0xff] %v434_v9  ;;  %581 = vst [vmem:[%s1123_s7 + $0x10] sm:$0xff] %v505_v0 }
 0x2e2   :  { %580 = vst [vmem:[%s1123_s7 + $0x8] sm:$0xff] %v436_v12  ;;  %582 = vst [vmem:[%s1123_s7 + $0x18] sm:$0xff] %v507_v13 }
 0x2fe   :  { %v575_v16 = vpop.f32.mrb[4].mxu0 }
 0x2ff   :  { %v576_v17 = vadd.f32 %v575_v16, %v361_v15  ;;  %v747_v18 = vpop.f32.mrb[5].mxu0 }
 0x301   :  { %583 = vst [vmem:[%s1123_s7 + $0x20] sm:$0xff] %v576_v17 }
 0x302   :  { %588 = vsyncpa [#allocation3], 1 }
 0x303   :  { %589 = vsyncpa [#allocation5], 1 }

</bundles_post_ra>
